<compile_context>
chip_gen: v6e
topology: v6e:2x2x1
jax: 0.10.0
libtpu: 0.0.40
codegen_flags: <defaults>
</compile_context>

<pallas_src>
import functools

import jax
import jax.numpy as jnp
from jax.experimental import pallas as pl
from jax.experimental.pallas import tpu as pltpu


def _cdiv(a, b):
    return -(-a // b)


def _round_up(a, b):
    return _cdiv(a, b) * b


def _plan_tiles(hw, c, pred_itemsize):
    """Pick (t_pix, P, n_chunks, vmem_limit_bytes) from a VMEM-aware budget."""
    try:
        vmem_cap = int(pltpu.get_tpu_info().vmem_capacity_bytes)
    except Exception:
        vmem_cap = 64 << 20  # conservative (v7x per-TC physical)

    # Per-lane VMEM cost estimate (bytes per pixel lane):
    #   pred:   2 double-buffered input blocks         -> 2 * C * itemsize
    #   temps:  f32 cast, exp, one-hot select, ...     -> ~4 * C * 4
    #   labels: 2 buffers, int32 worst case            -> 2 * 4
    #   output accumulator + small masks               -> ~3 * 4
    per_lane = 2 * c * pred_itemsize + 4 * c * 4 + 2 * 4 + 3 * 4
    budget = min(vmem_cap // 2, 32 << 20)

    cap = budget // per_lane
    cap = min(cap, 65536)          # lane-count cap
    cap -= cap % 128
    cap = max(cap, 128)

    hw_pad = _round_up(hw, 128)
    t_pix = min(hw_pad, cap)

    n_total = _cdiv(hw, t_pix)
    # Pixel-split for v7x megacore when the per-image chunk count allows it.
    if n_total >= 2 and n_total % 2 == 0:
        p = 2
    else:
        p = 1
    n_chunks = n_total // p

    vmem_limit = min(vmem_cap * 3 // 4, 96 << 20)
    vmem_limit = max(vmem_limit, 16 << 20)
    return t_pix, p, n_chunks, int(vmem_limit)


def _nmae_kernel(ymin_ref, pred_ref, lab_ref, out_ref, *, hw, padded):
    # out_ref is a (1, 1, 1, T_PIX) f32 partial-sum vector, VMEM-resident
    # across the pixel-chunk (reduction) grid axis for the current (n, p).
    @pl.when(pl.program_id(2) == 0)
    def _():
        out_ref[...] = jnp.zeros_like(out_ref)

    logits = pred_ref[0].astype(jnp.float32)                 # (C, T_PIX)
    c, t = logits.shape

    # Fused 255 -> min relabel + int cast (scalar y_min comes from SMEM).
    labels = lab_ref[0].astype(jnp.int32)                    # (1, T_PIX)
    y_min = ymin_ref[0]
    labels = jnp.where(labels == 255, y_min, labels)

    # Softmax pieces over the class (sublane) axis; only p_true is formed.
    m = jnp.max(logits, axis=0, keepdims=True)                # (1, T_PIX)
    e = jnp.exp(logits - m)                                   # (C, T_PIX)
    sum_e = jnp.sum(e, axis=0, keepdims=True)                 # (1, T_PIX)

    classes = jax.lax.broadcasted_iota(jnp.int32, (c, t), 0)
    e_true = jnp.sum(jnp.where(classes == labels, e, 0.0),
                     axis=0, keepdims=True)                   # (1, T_PIX)
    p_true = e_true / sum_e                                   # (1, T_PIX)

    if padded:
        # Mask out-of-range pixels of boundary blocks (ragged HW support).
        base = (pl.program_id(1) * pl.num_programs(2) + pl.program_id(2)) * t
        pix = jax.lax.broadcasted_iota(jnp.int32, (1, t), 1) + base
        p_true = jnp.where(pix < hw, p_true, 0.0)

    out_ref[...] += p_true[None, None]                        # (1, 1, 1, T_PIX)


def nmae_loss(pred_nchw, y_true, scale=1.0, backlabel=None):
    """pred_nchw: (N, C, H, W) float logits (f32 or bf16); y_true: (N, H, W) ints."""
    # NOTE: `backlabel` is computed but unused in the torch loss -> ignored.
    N, C, H, W = pred_nchw.shape
    HW = H * W

    # Global label min (tiny XLA reduction); relabel itself is fused in-kernel.
    y_min = jnp.min(y_true).astype(jnp.int32).reshape(1)

    pred3d = pred_nchw.reshape(N, C, HW)          # free reshape, no transpose
    lab3d = y_true.reshape(N, 1, HW)              # original (possibly narrow) dtype

    t_pix, P, n_chunks, vmem_limit = _plan_tiles(HW, C, pred_nchw.dtype.itemsize)
    padded = (P * n_chunks * t_pix) != HW

    kernel = functools.partial(_nmae_kernel, hw=HW, padded=padded)

    partials = pl.pallas_call(
        kernel,
        out_shape=jax.ShapeDtypeStruct((N, P, 1, t_pix), jnp.float32),
        grid_spec=pltpu.PrefetchScalarGridSpec(
            num_scalar_prefetch=1,
            grid=(N, P, n_chunks),
            in_specs=[
                pl.BlockSpec((1, C, t_pix),
                             lambda n, p, j, ymin: (n, 0, p * n_chunks + j)),
                pl.BlockSpec((1, 1, t_pix),
                             lambda n, p, j, ymin: (n, 0, p * n_chunks + j)),
            ],
            out_specs=pl.BlockSpec((1, 1, 1, t_pix),
                                   lambda n, p, j, ymin: (n, p, 0, 0)),
        ),
        compiler_params=pltpu.CompilerParams(
            dimension_semantics=("parallel", "parallel", "arbitrary"),
            vmem_limit_bytes=vmem_limit),
    )(y_min, pred3d, lab3d)

    total_p_true = jnp.sum(partials)              # tiny reduction in plain JAX
    norm = 1.0 / (C - 1)
    # mean(1 - p_true) == 1 - sum(p_true) / (N*HW)
    return scale * norm * (1.0 - total_p_true / (N * HW))


def _reference(pred_nchw, y_true, scale=1.0):
    # pure-JAX reference mirroring the torch NMAE module
    y_min = jnp.min(y_true)
    y = jnp.where(y_true == 255, y_min, y_true).astype(jnp.int32)
    C = pred_nchw.shape[1]
    p = jax.nn.softmax(pred_nchw.astype(jnp.float32), axis=1)      # (N,C,H,W)
    one_hot = jax.nn.one_hot(y, C, axis=1, dtype=jnp.float32)      # (N,C,H,W)
    loss = 1.0 - jnp.sum(one_hot * p, axis=1)                      # (N,H,W)
    return scale * (1.0 / (C - 1)) * jnp.mean(loss)


if __name__ == "__main__":
    key = jax.random.PRNGKey(0)
    k1, k2 = jax.random.split(key)

    N, C, H, W = 2, 4, 16, 16
    pred = jax.random.normal(k1, (N, C, H, W), dtype=jnp.float32)
    y_true = jax.random.randint(k2, (N, H, W), 0, C, dtype=jnp.int32)
    # exercise the 255-replacement path deterministically
    y_true = y_true.at[0, 0, 0].set(255)

    out = nmae_loss(pred, y_true, scale=1.0)
    out = jax.block_until_ready(out)

    ref = _reference(pred, y_true, scale=1.0)
    assert jnp.allclose(out, ref, atol=1e-5, rtol=1e-5), (out, ref)

    print("KERNEL_OK")
</pallas_src>

<mosaic_0001>
module attributes {stable_mosaic.version = 11 : i64} {
  func.func @_nmae_kernel(%arg0: i32, %arg1: i32, %arg2: i32, %arg3: memref<1xi32, #tpu.memory_space<smem>>, %arg4: memref<1x4x256xf32, #tpu.memory_space<vmem>>, %arg5: memref<1x1x256xi32, #tpu.memory_space<vmem>>, %arg6: memref<1x1x1x256xf32, #tpu.memory_space<vmem>>) attributes {dimension_semantics = [#tpu.dimension_semantics<parallel>, #tpu.dimension_semantics<parallel>, #tpu.dimension_semantics<arbitrary>], iteration_bounds = array<i64: 2, 1, 1>, scalar_prefetch = 1 : i64, scratch_operands = 0 : i64, tpu.core_type = #tpu.core_type<tc>, window_params = [{transform_indices = @transform_0, window_bounds = array<i64: 1, 4, 256>}, {transform_indices = @transform_1, window_bounds = array<i64: 1, 1, 256>}, {transform_indices = @transform_2, window_bounds = array<i64: 1, 1, 1, 256>}]} {
    %c0_i32 = arith.constant 0 : i32
    %0 = arith.cmpi eq, %arg2, %c0_i32 : i32
    %1 = arith.extui %0 : i1 to i32
    %c0_i32_0 = arith.constant 0 : i32
    %2 = arith.cmpi ne, %1, %c0_i32_0 : i32
    scf.if %2 {
      %cst_18 = arith.constant 0.000000e+00 : f32
      %31 = vector.broadcast %cst_18 : f32 to vector<1x1x1x256xf32>
      %c0_19 = arith.constant 0 : index
      %c0_20 = arith.constant 0 : index
      %c0_21 = arith.constant 0 : index
      %c0_22 = arith.constant 0 : index
      %32 = vector.load %arg6[%c0_19, %c0_20, %c0_21, %c0_22] : memref<1x1x1x256xf32, #tpu.memory_space<vmem>>, vector<1x1x1x256xf32>
      tpu.vector_store %arg6[%c0_19, %c0_20, %c0_21, %c0_22], %31 {strides = array<i32>} : memref<1x1x1x256xf32, #tpu.memory_space<vmem>>, vector<1x1x1x256xf32>,
    } else {
    }
    %c0 = arith.constant 0 : index
    %c0_1 = arith.constant 0 : index
    %c0_2 = arith.constant 0 : index
    %3 = vector.load %arg4[%c0, %c0_1, %c0_2] : memref<1x4x256xf32, #tpu.memory_space<vmem>>, vector<1x4x256xf32>
    %4 = vector.shape_cast %3 : vector<1x4x256xf32> to vector<4x256xf32>
    %c0_3 = arith.constant 0 : index
    %c0_4 = arith.constant 0 : index
    %c0_5 = arith.constant 0 : index
    %5 = vector.load %arg5[%c0_3, %c0_4, %c0_5] : memref<1x1x256xi32, #tpu.memory_space<vmem>>, vector<1x1x256xi32>
    %6 = vector.shape_cast %5 : vector<1x1x256xi32> to vector<1x256xi32>
    %c0_6 = arith.constant 0 : index
    %7 = memref.load %arg3[%c0_6] : memref<1xi32, #tpu.memory_space<smem>>
    %c255_i32 = arith.constant 255 : i32
    %8 = vector.broadcast %c255_i32 : i32 to vector<1x256xi32>
    %9 = arith.cmpi eq, %6, %8 : vector<1x256xi32>
    %10 = vector.broadcast %7 : i32 to vector<1x256xi32>
    %11 = arith.select %9, %10, %6 : vector<1x256xi1>, vector<1x256xi32>
    %cst = arith.constant dense<0xFF800000> : vector<256xf32>
    %12 = vector.multi_reduction <maximumf>, %4, %cst [0] : vector<4x256xf32> to vector<256xf32>
    %13 = vector.shape_cast %12 : vector<256xf32> to vector<1x256xf32>
    %14 = vector.broadcast %13 : vector<1x256xf32> to vector<4x256xf32>
    %15 = arith.subf %4, %14 : vector<4x256xf32>
    %16 = math.exp %15 : vector<4x256xf32>
    %cst_7 = arith.constant dense<0.000000e+00> : vector<256xf32>
    %17 = vector.multi_reduction <add>, %16, %cst_7 [0] : vector<4x256xf32> to vector<256xf32>
    %18 = vector.shape_cast %17 : vector<256xf32> to vector<1x256xf32>
    %19 = tpu.iota {dimensions = array<i32: 0>} : vector<4x256xi32>
    %20 = vector.broadcast %11 : vector<1x256xi32> to vector<4x256xi32>
    %21 = arith.cmpi eq, %19, %20 : vector<4x256xi32>
    %cst_8 = arith.constant 0.000000e+00 : f32
    %22 = vector.broadcast %cst_8 : f32 to vector<4x256xf32>
    %23 = arith.select %21, %16, %22 : vector<4x256xi1>, vector<4x256xf32>
    %cst_9 = arith.constant dense<0.000000e+00> : vector<256xf32>
    %24 = vector.multi_reduction <add>, %23, %cst_9 [0] : vector<4x256xf32> to vector<256xf32>
    %25 = vector.shape_cast %24 : vector<256xf32> to vector<1x256xf32>
    %26 = arith.divf %25, %18 : vector<1x256xf32>
    %c0_10 = arith.constant 0 : index
    %c0_11 = arith.constant 0 : index
    %c0_12 = arith.constant 0 : index
    %c0_13 = arith.constant 0 : index
    %27 = vector.load %arg6[%c0_10, %c0_11, %c0_12, %c0_13] : memref<1x1x1x256xf32, #tpu.memory_space<vmem>>, vector<1x1x1x256xf32>
    %28 = vector.shape_cast %26 : vector<1x256xf32> to vector<1x1x1x256xf32>
    %29 = arith.addf %27, %28 : vector<1x1x1x256xf32>
    %c0_14 = arith.constant 0 : index
    %c0_15 = arith.constant 0 : index
    %c0_16 = arith.constant 0 : index
    %c0_17 = arith.constant 0 : index
    %30 = vector.load %arg6[%c0_14, %c0_15, %c0_16, %c0_17] : memref<1x1x1x256xf32, #tpu.memory_space<vmem>>, vector<1x1x1x256xf32>
    tpu.vector_store %arg6[%c0_14, %c0_15, %c0_16, %c0_17], %29 {strides = array<i32>} : memref<1x1x1x256xf32, #tpu.memory_space<vmem>>, vector<1x1x1x256xf32>,
    return
  }
  func.func @transform_0(%arg0: i32, %arg1: i32, %arg2: i32, %arg3: memref<1xi32, #tpu.memory_space<smem>>) -> (i32, i32, i32) {
    %c1_i32 = arith.constant 1 : i32
    %0 = arith.muli %arg1, %c1_i32 : i32
    %1 = arith.addi %0, %arg2 : i32
    %c0_i32 = arith.constant 0 : i32
    %c0_i32_0 = arith.constant 0 : i32
    return %arg0, %c0_i32, %1 : i32, i32, i32
  }
  func.func @transform_1(%arg0: i32, %arg1: i32, %arg2: i32, %arg3: memref<1xi32, #tpu.memory_space<smem>>) -> (i32, i32, i32) {
    %c1_i32 = arith.constant 1 : i32
    %0 = arith.muli %arg1, %c1_i32 : i32
    %1 = arith.addi %0, %arg2 : i32
    %c0_i32 = arith.constant 0 : i32
    %c0_i32_0 = arith.constant 0 : i32
    return %arg0, %c0_i32, %1 : i32, i32, i32
  }
  func.func @transform_2(%arg0: i32, %arg1: i32, %arg2: i32, %arg3: memref<1xi32, #tpu.memory_space<smem>>) -> (i32, i32, i32, i32) {
    %c0_i32 = arith.constant 0 : i32
    %c0_i32_0 = arith.constant 0 : i32
    %c0_i32_1 = arith.constant 0 : i32
    return %arg0, %arg1, %c0_i32, %c0_i32_0 : i32, i32, i32, i32
  }
}

</mosaic_0001>

<bundles_post_ra>
// kernel: tpu_custom_call.1
= control target key start
LH: loop header
LB: loop body
LE: loop exit
PB: predicated region body
PF: predicated region fallthrough
CT: control target
= control target key end

     0   :  { %s937_s0 = inlined_call_operand.<no memory space> [shape: s32[1], index: 0, kind: input, shape index: {}]   ;;  %s938_s1 = inlined_call_operand.hbm [shape: f32[2,4,256], index: 1, kind: input, shape index: {}]   ;;  %s939_s2 = inlined_call_operand.hbm [shape: s32[2,1,256], index: 2, kind: input, shape index: {}]   ;;  %s940_s3 = inlined_call_operand.hbm [shape: f32[2,1,1,256], index: 3, kind: output, shape index: {}]  }
   0x1   :  { %8 = sst [smem:[#allocation3]] %s937_s0 }
   0x2   :  { %9 = vsyncpa [#allocation5], 0 }
   0x3   :  { %11 = vsyncpa [#allocation5 + $0x1], 0 }
   0x4   :  { %12 = vsyncpa [#allocation8], 0 }
   0x5   :  { %14 = vsyncpa [#allocation8 + $0x1], 0 }
   0x6   :  { %15 = vsyncpa [#allocation6], 0 }
   0x7   :  { %17 = vsyncpa [#allocation6 + $0x1], 0  ;;  %s753_s14 = smov 0   ;;  %s755_s15 = smov 0  }
   0x8   :  { %s757_s16 = smov 0   ;;  %s759_s17 = smov 0  }
   0x9   :  { %s761_s18 = smov 0   ;;  %s763_s19 = smov 0  }
   0xa LB: > { %s485_s0 = sadd.s32 4294967295, %s723_s19   ;;  %s486_s20 = sadd.s32 4294967294, %s723_s19   ;;  %s723_s19 = sphi %s763_s19, %s23_s19   ;;  %s719_s18 = sphi %s761_s18, %s954_s18   ;;  %s715_s17 = sphi %s759_s17, %s953_s17   ;;  %s711_s16 = sphi %s757_s16, %s952_s16   ;;  %s707_s15 = sphi %s755_s15, %s951_s15   ;;  %s703_s14 = sphi %s753_s14, %s950_s14  }
   0xb   : > { %s42_s21 = sadd.s32 1, %s719_s18  ;;  %s53_s22 = sadd.s32 1, %s711_s16 }
   0xc   : > { %p44_p0 = scmp.ge.s32.totalorder %s42_s21, 2  ;;  %p60_p1 = scmp.ne.s32.totalorder %s711_s16, %s707_s15 }
   0xd   : > { %p61_p2 = scmp.eq.s32.totalorder %s723_s19, 0  ;;  %p66_p3 = scmp.ne.s32.totalorder %s707_s15, %s703_s14 }
   0xe   : > { %s956_s21 = smov (%p44_p0, %s42_s21), 0  ;;  %p67_p5 = scmp.eq.s32.totalorder %s485_s0, 0 }
   0xf   : > { %p794_p4 = por %p61_p2, %p60_p1  ;;  %s48_s24 = ssub.s32 %s719_s18, %s956_s21 }
  0x10   : > { %p122_p6 = scmp.eq.s32.totalorder %s485_s0, 1  ;;  %p51_p7 = scmp.eq.s32.totalorder %s48_s24, 0 }
  0x11   : > { %p800_p8 = por %p67_p5, %p66_p3  ;;  %p128_p10 = scmp.eq.s32.totalorder %s486_s20, 1 }
  0x12   : > { %p804_p9 = por %p122_p6, %p60_p1  ;;  %p524_p13 = scmp.lt.s32.totalorder %s723_s19, 2 }
  0x13   : > { %s809_s27 = scalar_select %p51_p7, %s711_s16, %s53_s22  }
  0x14   : > { %p811_p11 = por %p128_p10, %p66_p3  ;;  %s818_s29 = sand.u32 1, %s711_s16  }
  0x15   : > { %s489_s30 = sshll.u32 %s818_s29, 3  ;;  %s504_s4 = sshll.u32 %s719_s18, 7 }
  0x16   : > { %s161_s7 = scalar_lea.hbm %s938_s1, %s504_s4  ;;  %s152_s8 = scalar_lea.vmem [#allocation4], %s489_s30 }
  0x17   : > { %s163_s9 = sshll.u32 %s152_s8, 4  ;;  %p827_p0 = pnand %p524_p13, %p794_p4  ;;  %s164_s9 = int_to_ptr.vmem [resolvable:$true] %s163_s9 }
  0x18   : > { %p495_p1 = scmp.ge.s32.totalorder %s723_s19, 1  ;;  %p190_p2 = scmp.lt.s32.totalorder %s723_s19, 3 }
  0x19   : > { %s149_s11 = scalar_lea.sflag [#allocation5], %s818_s29  ;;  %p585_p3 = pneg %p827_p0 }
  0x1a   : > { %s596_s12 = scalar_lea.vmem %s164_s9, 128  ;;  %s725_s13 = smov [#allocation4]  }
  0x1b   : > { %p597_p5 = scmp.ne.s32.totalorder %s164_s9, %s596_s12  ;;  %s601_s0 = sshll.u32 %s725_s13, 4  ;;  %s602_s0 = int_to_ptr.vmem [resolvable:$false] %s601_s0 }
  0x1c   : > { %s603_s20 = scalar_lea.vmem %s602_s0, 256  ;;  %p604_p4 = scmp.lt.s32.totalorder %s164_s9, %s602_s0 }
  0x1d   : > { %p599_p6 = pnand %p597_p5, %p585_p3  ;;  %p605_p10 = scmp.lt.s32.totalorder %s603_s20, %s596_s12 }
  0x1f   : > { %p600_p7 = pneg %p599_p6  ;;  %p606_p13 = por %p605_p10, %p604_p4 }
  0x21   : > { %p607_p12 = pnand %p606_p13, %p600_p7 }
  0x23   : > { %610 = shalt.err (!%p607_p12)
}
  0x24   : > { %516 = dma.hbm_to_vmem [thread:$0]  (!%p827_p0), %s161_s7, 128, %s164_s9, %s149_s11  }
  0x25   : > { %p845_p5 = pnand %p495_p1, %p190_p2  ;;  %s492_s23 = sshll.u32 %s818_s29, 1 }
  0x26   : > { %s505_s24 = sshll.u32 %s719_s18, 5  ;;  %s174_s6 = scalar_lea.vmem [#allocation7], %s492_s23 }
  0x27   : > { %s183_s5 = scalar_lea.hbm %s939_s2, %s505_s24  ;;  %s185_s8 = sshll.u32 %s174_s6, 4  ;;  %s186_s8 = int_to_ptr.vmem [resolvable:$true] %s185_s8 }
  0x28   : > { %s171_s12 = scalar_lea.sflag [#allocation8], %s818_s29  ;;  %s624_s13 = scalar_lea.vmem %s186_s8, 32 }
  0x29   : > { %p625_p12 = scmp.ne.s32.totalorder %s186_s8, %s624_s13  ;;  %s726_s7 = smov [#allocation7]  }
  0x2a   : > { %s629_s9 = sshll.u32 %s726_s7, 4  ;;  %s630_s9 = int_to_ptr.vmem [resolvable:$false] %s629_s9 }
  0x2b   : > { %p627_p6 = pnand %p625_p12, %p585_p3  ;;  %s631_s11 = scalar_lea.vmem %s630_s9, 64 }
  0x2c   : > { %p632_p1 = scmp.lt.s32.totalorder %s186_s8, %s630_s9  ;;  %p633_p2 = scmp.lt.s32.totalorder %s631_s11, %s624_s13 }
  0x2d   : > { %p628_p7 = pneg %p627_p6 }
  0x2e   : > { %p634_p4 = por %p633_p2, %p632_p1 }
  0x30   : > { %p635_p10 = pnand %p634_p4, %p628_p7 }
  0x32   : > { %638 = shalt.err (!%p635_p10)
}
  0x33   : > { %519 = dma.hbm_to_vmem [thread:$0]  (!%p827_p0), %s183_s5, 32, %s186_s8, %s171_s12  }
  0x34   : > { %194 = sbr.rel (%p845_p5) target bundleno = 149 (0x95), region = 28  ;;  %s863_s29 = sand.u32 (!%p845_p5), 1, %s707_s15  }
  0x35   : > { %s496_s0 = sshll.u32 (!%p845_p5), %s863_s29, 3  ;;  %s197_s20 = scalar_lea.sflag (!%p845_p5), [#allocation5], %s863_s29 }
  0x36   : > { %s200_s23 = scalar_lea.vmem (!%p845_p5), [#allocation4], %s496_s0 }
  0x39   : > { %690 = dma.done.wait (%p800_p8), %s197_s20, 128  }
  0x3a   : > { %692 = vsyncadd (%p800_p8), %s197_s20, 4294967168  ;;  %s497_s10 = sshll.u32 %s863_s29, 1  ;;  %s206_s22 = scalar_lea.sflag [#allocation8], %s863_s29 }
  0x3b   : > { %s209_s24 = scalar_lea.vmem [#allocation7], %s497_s10 }
  0x3c   : > { %694 = dma.done.wait (%p800_p8), %s206_s22, 32  }
  0x3d   : > { %696 = vsyncadd (%p800_p8), %s206_s22, 4294967264  ;;  %v243_v0 = vlaneseq  ;;  %s881_s30 = scalar_lea.vmem [#allocation9], %s497_s10  ;;  %v727_v2 = vmov 0.0   ;;  %vm257_vm1 = vcmask 1043456   ;;  %v248_v3 = vld [vmem:[%s200_s23] sm:$0xff]  ;;  %s250_s25 = sld [smem:[#allocation3]] }
  0x3e   : > { %v255_v4 = vcombine.high %v248_v3, %v248_v3  ;;  %v258_v5 = vsel %vm257_vm1, %v248_v3, -inf  ;;  %v249_v21 = vld [vmem:[%s209_s24] sm:$0x3]  ;;  %v728_v60 = vmov 1966171168   ;;  %s506_s4 = sshll.u32 %s715_s17, 5 }
  0x3f   : > { %vm877_vm0 = vcmp.lt.s32.totalorder %v243_v0, 256  ;;  %v259_v6 = vrot.slane %v258_v5, 4  ;;  %v297_v23 = vshrl.u32 %v243_v0, 7  ;;  %vm251_vm2 = vcmp.eq.s32.totalorder %v249_v21, 255  ;;  %s370_s5 = sshll.u32 %s881_s30, 4  ;;  %s368_s12 = scalar_lea.hbm %s940_s3, %s506_s4  ;;  %s371_s5 = int_to_ptr.vmem [resolvable:$true] %s370_s5 }
  0x40   : > { %247 = vst.msk [vmem:[%s881_s30] sm:$0x3] %vm877_vm0, %v727_v2  ;;  %v265_v7 = vsel %vm257_vm1, %v255_v4, -inf  ;;  %v333_v61 = vunpack.c.l.s4 %v728_v60  ;;  %s354_s13 = scalar_lea.sflag [#allocation6], %s863_s29  ;;  %s639_s7 = scalar_lea.vmem %s371_s5, 32 }
  0x41   : > { %v260_v8 = vmax.f32 %v258_v5, %v259_v6  ;;  %v266_v9 = vrot.slane %v265_v7, 4  ;;  %v300_v25 = vsub.s32 0, %v297_v23  ;;  %v304_v27 = vsub.s32 1, %v297_v23  ;;  %p640_p8 = scmp.ne.s32.totalorder %s371_s5, %s639_s7  ;;  %s729_s9 = smov [#allocation9]  }
  0x42   : > { %v334_v0 = vunpack.c.0.s8 %v333_v61  ;;  %s643_s11 = sshll.u32 %s729_s9, 4  ;;  %s644_s11 = int_to_ptr.vmem [resolvable:$false] %s643_s11 }
  0x43   : > { %v261_v10 = vrot.slane %v260_v8, 2  ;;  %v267_v11 = vmax.f32 %v265_v7, %v266_v9  ;;  %v252_v24 = vstv %s250_s25  ;;  %p641_p0 = pnand %p640_p8, %p804_p9  ;;  %s645_s17 = scalar_lea.vmem %s644_s11, 64 }
  0x44   : > { %v253_v26 = vsel %vm251_vm2, %v252_v24, %v249_v21  ;;  %v337_v6 = vsub.s32 %v334_v0, %v297_v23  ;;  %p646_p13 = scmp.lt.s32.totalorder %s371_s5, %s644_s11  ;;  %p647_p5 = scmp.lt.s32.totalorder %s645_s17, %s639_s7 }
  0x45   : > { %v262_v12 = vmax.f32 %v260_v8, %v261_v10  ;;  %v268_v13 = vrot.slane %v267_v11, 2  ;;  %v301_v28 = vrot.slane %v253_v26, %v300_v25  ;;  %v305_v29 = vrot.slane %v253_v26, %v304_v27  ;;  %p642_p3 = pneg %p641_p0 }
  0x46   : > { %p648_p12 = por %p647_p5, %p646_p13 }
  0x47   : > { %v263_v14 = vrot.slane %v262_v12, 1  ;;  %v269_v15 = vmax.f32 %v267_v11, %v268_v13  ;;  %vm306_vm3 = vcmp.eq.s32.totalorder %v297_v23, %v301_v28  ;;  %vm307_vm4 = vcmp.eq.s32.totalorder %v297_v23, %v305_v29  ;;  %v328_v9 = vld [vmem:[%s881_s30] sm:$0x3] }
  0x48   : > { %p649_p6 = pnand %p648_p12, %p642_p3 }
  0x49   : > { %v264_v16 = vmax.f32 %v262_v12, %v263_v14  ;;  %v270_v17 = vrot.slane %v269_v15, 1 }
  0x4b   : > { %v271_v18 = vmax.f32 %v269_v15, %v270_v17 }
  0x4d   : > { %v274_v19 = vcombine.low %v264_v16, %v271_v18 }
  0x4f   : > { %v276_v20 = vsub.f32 %v248_v3, %v274_v19 }
  0x51   : > { %v277_v22 = vmul.f32 1.442695, %v276_v20 }
  0x53   : > { %577 = vpow2.f32 %v277_v22 }
  0x60   : > { %v578_v30 = vpop.eup %577 }
  0x61   : > { %v280_v31 = vcombine.high %v578_v30, %v578_v30  ;;  %v282_v32 = vsel %vm257_vm1, %v578_v30, 0.0  ;;  %v308_v33 = vsel %vm306_vm3, %v578_v30, 0.0 }
  0x62   : > { %v283_v34 = vrot.slane %v282_v32, 4  ;;  %v310_v35 = vsel %vm257_vm1, %v308_v33, 0.0 }
  0x63   : > { %v289_v36 = vsel %vm257_vm1, %v280_v31, 0.0  ;;  %v309_v37 = vsel %vm307_vm4, %v280_v31, 0.0  ;;  %v311_v40 = vrot.slane %v310_v35, 4 }
  0x64   : > { %v284_v38 = vadd.f32 %v283_v34, %v282_v32  ;;  %v290_v39 = vrot.slane %v289_v36, 4  ;;  %v317_v41 = vsel %vm257_vm1, %v309_v37, 0.0 }
  0x65   : > { %v318_v44 = vrot.slane %v317_v41, 4  ;;  %v312_v47 = vadd.f32 %v311_v40, %v310_v35 }
  0x66   : > { %v285_v42 = vrot.slane %v284_v38, 2  ;;  %v291_v43 = vadd.f32 %v290_v39, %v289_v36 }
  0x67   : > { %v319_v50 = vadd.f32 %v318_v44, %v317_v41  ;;  %v313_v53 = vrot.slane %v312_v47, 2 }
  0x68   : > { %v286_v45 = vadd.f32 %v285_v42, %v284_v38  ;;  %v292_v46 = vrot.slane %v291_v43, 2 }
  0x69   : > { %v320_v55 = vrot.slane %v319_v50, 2  ;;  %v314_v56 = vadd.f32 %v313_v53, %v312_v47 }
  0x6a   : > { %v287_v48 = vrot.slane %v286_v45, 1  ;;  %v293_v49 = vadd.f32 %v292_v46, %v291_v43 }
  0x6b   : > { %v321_v57 = vadd.f32 %v320_v55, %v319_v50  ;;  %v315_v58 = vrot.slane %v314_v56, 1 }
  0x6c   : > { %v288_v51 = vadd.f32 %v287_v48, %v286_v45  ;;  %v294_v52 = vrot.slane %v293_v49, 1 }
  0x6d   : > { %v322_v59 = vrot.slane %v321_v57, 1  ;;  %v316_v62 = vadd.f32 %v315_v58, %v314_v56 }
  0x6e   : > { %v295_v54 = vadd.f32 %v294_v52, %v293_v49  ;;  %579 = vrcp.f32 %v288_v51 }
  0x6f   : > { %v323_v63 = vadd.f32 %v322_v59, %v321_v57 }
  0x70   : > { %581 = vrcp.f32 %v295_v54 }
  0x7b   : > { %v580_v2 = vpop.eup %579 }
  0x7c   : > { %v325_v3 = vmul.f32 %v580_v2, %v316_v62 }
  0x7d   : > { %v582_v4 = vpop.eup %581 }
  0x7e   : > { %v327_v5 = vmul.f32 %v582_v4, %v323_v63 }
  0x80   : > { %v331_v7 = vcombine.low %v325_v3, %v327_v5 }
  0x82   : > { %v338_v8 = vrot.slane %v331_v7, %v337_v6 }
  0x84   : > { %v345_v10 = vrot.slane %v338_v8, %v337_v6 }
  0x86   : > { %v347_v11 = vadd.f32 %v345_v10, %v328_v9 }
  0x88   : > { %352 = vst.msk [vmem:[%s881_s30] sm:$0x3] %vm877_vm0, %v347_v11 }
  0x89   : > { %652 = shalt.err (!%p649_p6)
}
  0x8a   : > { %s653_s0 = scalar_lea.hbm %s368_s12, 32  ;;  %s657_s23 = scalar_lea.hbm %s940_s3, 64 }
  0x8b   : > { %p654_p7 = scmp.ne.s32.totalorder %s368_s12, %s653_s0  ;;  %p658_p4 = scmp.lt.s32.totalorder %s368_s12, %s940_s3 }
  0x8c   : > { %p659_p10 = scmp.lt.s32.totalorder %s657_s23, %s653_s0 }
  0x8d   : > { %p655_p1 = pnand %p654_p7, %p804_p9 }
  0x8e   : > { %p660_p8 = por %p659_p10, %p658_p4 }
  0x8f   : > { %p656_p2 = pneg %p655_p1 }
  0x91   : > { %p661_p0 = pnand %p660_p8, %p656_p2 }
  0x93   : > { %664 = shalt.err (!%p661_p0)
}
  0x94   : > { %511 = dma.vmem_to_hbm [thread:$0]  (%p804_p9), %s371_s5, 32, %s368_s12, %s354_s13  }
  0x95 PF: > { %s382_s24 = sand.u32 1, %s703_s14   ;;  %p949_p3 = scmp.ge.s32.totalorder %s723_s19, 2 }
  0x96   : > { %s383_s30 = scalar_lea.sflag [#allocation6], %s382_s24 }
  0x97   : > { %p521_p13 = pnand %p949_p3, %p811_p11 }
  0x99   : > { %p522_p5 = pneg %p521_p13 }
  0x9b   : > { %698 = dma.done.wait (%p522_p5), %s383_s30, 32  }
  0x9c   : > { %700 = vsyncadd (%p522_p5), %s383_s30, 4294967264  ;;  %s23_s19 = sadd.s32 1, %s723_s19   ;;  %s950_s14 = smov %s707_s15 }
  0x9d   : > { %p20_p12 = scmp.ge.s32.totalorder %s23_s19, 4   ;;  %s951_s15 = smov %s711_s16 }
  0x9e   : > { %s952_s16 = smov %s809_s27  ;;  %s953_s17 = smov %s719_s18 }
  0x9f   : > { %s954_s18 = smov %s956_s21  ;;  %22 = sbr.rel (!%p20_p12) target bundleno = 10 (0xa), region = 90 }
  0xa4   :  { %388 = vsyncpa [#allocation5], 1 }
  0xa5   :  { %390 = vsyncpa [#allocation5 + $0x1], 1 }
  0xa6   :  { %391 = vsyncpa [#allocation8], 1 }
  0xa7   :  { %393 = vsyncpa [#allocation8 + $0x1], 1 }
  0xa8   :  { %394 = vsyncpa [#allocation6], 1 }
  0xa9   :  { %396 = vsyncpa [#allocation6 + $0x1], 1 }

</bundles_post_ra>
